<compile_context>
chip_gen: v5e
topology: v5e:2x2
jax: 0.10.0
libtpu: 0.0.40
codegen_flags: <defaults>
</compile_context>

<pallas_src>
import functools

import jax
import jax.numpy as jnp
from jax.experimental import pallas as pl
from jax.experimental.pallas import tpu as pltpu


def _focal_kernel(x_ref, t_ref, o_ref, *, n, hw, nb, tile, alpha, gamma):
    """One grid step.

    x_ref: (Nb, C, TM) logits block (native dtype).
    t_ref: (Nb, 1, TM) labels block (int8 / int32, upcast in-kernel).
    o_ref: (1, 1, 1, 1) partial sum of focal loss for this (row, col) block.
    """
    i = pl.program_id(0)                            # batch-row block
    j = pl.program_id(1)                            # spatial column tile

    x = x_ref[...].astype(jnp.float32)              # (Nb, C, TM)
    labels = t_ref[...].astype(jnp.int32)           # (Nb, 1, TM)
    _, C, TM = x.shape

    # In-kernel validity masks for padded tails (no extra HBM mask stream).
    col_ids = j * tile + jax.lax.broadcasted_iota(jnp.int32, (1, 1, TM), 2)
    row_ids = i * nb + jax.lax.broadcasted_iota(jnp.int32, (nb, 1, TM), 0)
    valid = (col_ids < hw) & (row_ids < n)          # (Nb, 1, TM)

    # Numerically-stable log-softmax pieces over the class axis (sublanes).
    mx = jnp.max(x, axis=1, keepdims=True)          # (Nb, 1, TM)
    xs = x - mx
    exp_xs = jnp.exp(xs)                            # reused for pt below
    se = jnp.sum(exp_xs, axis=1, keepdims=True)     # (Nb, 1, TM)

    # Target logit / target prob selected via compare-against-iota
    # (no one-hot materialized in HBM).
    cls = jax.lax.broadcasted_iota(jnp.int32, (nb, C, TM), 1)
    onehot = cls == labels                          # (Nb, C, TM)
    x_t = jnp.sum(jnp.where(onehot, xs, 0.0), axis=1, keepdims=True)
    e_t = jnp.sum(jnp.where(onehot, exp_xs, 0.0), axis=1, keepdims=True)

    ce = jnp.log(se) - x_t                          # cross-entropy per pixel
    pt = e_t / se                                   # exp(-ce) without the exp
    one_minus_pt = jnp.maximum(1.0 - pt, 0.0)       # guard fp round-off

    # Integer-gamma fast path (default gamma=2): multiplies instead of
    # pow -> exp(gamma*log(x)).
    if float(gamma).is_integer() and 0.0 <= gamma <= 8.0:
        w = jnp.ones_like(one_minus_pt)
        for _ in range(int(gamma)):
            w = w * one_minus_pt
    else:
        w = one_minus_pt ** gamma

    focal = jnp.where(valid, alpha * w * ce, 0.0)   # (Nb, 1, TM)

    s = jnp.sum(focal, axis=2, keepdims=True)       # (Nb, 1, 1)
    s = jnp.sum(s, axis=0, keepdims=True)           # (1, 1, 1)
    o_ref[...] = s.reshape(1, 1, 1, 1)


def _vmem_capacity_bytes():
    try:
        info = pltpu.get_tpu_info()
        cap = getattr(info, "vmem_capacity_bytes", None)
        if cap:
            return int(cap)
    except Exception:
        pass
    return 64 << 20  # conservative fallback (v7x per-TC VMEM)


def _est_bytes_per_col(num_classes, in_itemsize, nb):
    """VMEM bytes per lane column for one grid step: sublane-padded,
    double-buffered inputs plus ~4 f32 in-kernel temporaries."""
    sub = {1: 32, 2: 16, 4: 8}.get(in_itemsize, 8)  # sublane pack granularity
    c_pad_in = -(-num_classes // sub) * sub
    c_pad_f32 = -(-num_classes // 8) * 8
    logits = nb * c_pad_in * in_itemsize            # one input buffer
    labels = nb * 32                                # (nb,1,t) block pads to 32 B/col
    temps = 4 * nb * c_pad_f32 * 4                  # xs, exp_xs, selects, focal (f32)
    return 2 * (logits + labels) + temps


def focal_loss(inputs, targets, alpha=1.0, gamma=2.0):
    """inputs: (N, C, H, W) float logits; targets: (N, H, W) integer labels.

    Returns mean over all pixels of alpha * (1 - pt)**gamma * ce.
    # TODO(synk): out-of-range labels (e.g. ignore_index=255) are not masked;
    # labels must be valid class ids, like F.cross_entropy without ignore_index.
    """
    N, C, H, W = inputs.shape
    HW = H * W
    itemsize = jnp.dtype(inputs.dtype).itemsize

    # Free, contiguous reshapes — no transpose / pad / upcast of logits.
    x = inputs.reshape(N, C, HW)
    # Labels ship narrow (int8 when C fits) to cut HBM bytes; upcast in-kernel.
    lbl_dtype = jnp.int8 if C <= 127 else jnp.int32
    t = targets.reshape(N, 1, HW).astype(lbl_dtype)

    vmem_cap = _vmem_capacity_bytes()
    budget = min(vmem_cap // 4, 24 << 20)                     # working-set target
    tile_cap = 4096 if vmem_cap <= (80 << 20) else 8192       # v7x vs v5e/v6e

    bpc1 = _est_bytes_per_col(C, itemsize, 1)
    if HW <= tile_cap and bpc1 * HW <= budget:
        # Small feature maps: whole spatial extent per step, batch rows per
        # step to amortize fixed per-grid-step pipeline overhead.
        tile = HW
        nb = int(max(1, min(N, budget // (bpc1 * HW))))
    else:
        nb = 1
        hw_pad = pl.cdiv(HW, 128) * 128
        tile = min(budget // bpc1, tile_cap, hw_pad)
        tile = max(128, (tile // 128) * 128)
        if tile >= HW:
            tile = HW
    n_row_blocks = pl.cdiv(N, nb)
    n_col_tiles = pl.cdiv(HW, tile)

    est_vmem = _est_bytes_per_col(C, itemsize, nb) * tile + (1 << 20)
    vmem_limit = int(min(int(0.9 * vmem_cap), max(2 * est_vmem, 32 << 20)))

    kernel = functools.partial(_focal_kernel, n=N, hw=HW, nb=nb, tile=tile,
                               alpha=float(alpha), gamma=float(gamma))

    partials = pl.pallas_call(
        kernel,
        out_shape=jax.ShapeDtypeStruct((n_row_blocks, n_col_tiles, 1, 1),
                                       jnp.float32),
        grid_spec=pltpu.PrefetchScalarGridSpec(
            num_scalar_prefetch=0,
            grid=(n_row_blocks, n_col_tiles),
            in_specs=[
                pl.BlockSpec((nb, C, tile), lambda i, j: (i, 0, j)),
                pl.BlockSpec((nb, 1, tile), lambda i, j: (i, 0, j)),
            ],
            out_specs=pl.BlockSpec((1, 1, 1, 1), lambda i, j: (i, j, 0, 0)),
        ),
        compiler_params=pltpu.CompilerParams(
            dimension_semantics=("parallel", "parallel"),
            vmem_limit_bytes=vmem_limit),
    )(x, t)

    return jnp.sum(partials) / (N * HW)


def _focal_loss_ref(inputs, targets, alpha=1.0, gamma=2.0):
    x = inputs.astype(jnp.float32)
    logp = jax.nn.log_softmax(x, axis=1)
    onehot = jax.nn.one_hot(targets, x.shape[1], axis=1, dtype=jnp.float32)
    ce = -jnp.sum(logp * onehot, axis=1)            # (N, H, W)
    pt = jnp.exp(-ce)
    focal = alpha * (1.0 - pt) ** gamma * ce
    return jnp.mean(focal)


if __name__ == "__main__":
    key = jax.random.PRNGKey(0)
    k1, k2 = jax.random.split(key)

    N, C, H, W = 2, 4, 16, 16
    inputs = jax.random.normal(k1, (N, C, H, W), dtype=jnp.float32)
    targets = jax.random.randint(k2, (N, H, W), 0, C, dtype=jnp.int32)

    loss = focal_loss(inputs, targets, alpha=1.0, gamma=2.0)
    loss = jax.block_until_ready(loss)

    ref = _focal_loss_ref(inputs, targets, alpha=1.0, gamma=2.0)
    assert jnp.allclose(loss, ref, atol=1e-5, rtol=1e-5), (loss, ref)

    print("KERNEL_OK")
</pallas_src>

<mosaic_0001>
module attributes {stable_mosaic.version = 11 : i64} {
  func.func @_focal_kernel(%arg0: i32, %arg1: i32, %arg2: memref<2x4x256xf32, #tpu.memory_space<vmem>>, %arg3: memref<2x1x256xi8, #tpu.memory_space<vmem>>, %arg4: memref<1x1x1x1xf32, #tpu.memory_space<vmem>>) attributes {dimension_semantics = [#tpu.dimension_semantics<parallel>, #tpu.dimension_semantics<parallel>], iteration_bounds = array<i64: 1, 1>, scalar_prefetch = 0 : i64, scratch_operands = 0 : i64, tpu.core_type = #tpu.core_type<tc>, window_params = [{transform_indices = @transform_0, window_bounds = array<i64: 2, 4, 256>}, {transform_indices = @transform_1, window_bounds = array<i64: 2, 1, 256>}, {transform_indices = @transform_2, window_bounds = array<i64: 1, 1, 1, 1>}]} {
    %c0 = arith.constant 0 : index
    %c0_0 = arith.constant 0 : index
    %c0_1 = arith.constant 0 : index
    %0 = vector.load %arg2[%c0, %c0_0, %c0_1] : memref<2x4x256xf32, #tpu.memory_space<vmem>>, vector<2x4x256xf32>
    %c0_2 = arith.constant 0 : index
    %c0_3 = arith.constant 0 : index
    %c0_4 = arith.constant 0 : index
    %1 = vector.load %arg3[%c0_2, %c0_3, %c0_4] : memref<2x1x256xi8, #tpu.memory_space<vmem>>, vector<2x1x256xi8>
    %2 = arith.extsi %1 : vector<2x1x256xi8> to vector<2x1x256xi32>
    %c256_i32 = arith.constant 256 : i32
    %3 = arith.muli %arg1, %c256_i32 : i32
    %4 = tpu.iota {dimensions = array<i32: 2>} : vector<1x1x256xi32>
    %5 = vector.broadcast %3 : i32 to vector<1x1x256xi32>
    %6 = arith.addi %5, %4 : vector<1x1x256xi32>
    %c2_i32 = arith.constant 2 : i32
    %7 = arith.muli %arg0, %c2_i32 : i32
    %8 = tpu.iota {dimensions = array<i32: 0>} : vector<2x1x256xi32>
    %9 = vector.broadcast %7 : i32 to vector<2x1x256xi32>
    %10 = arith.addi %9, %8 : vector<2x1x256xi32>
    %c256_i32_5 = arith.constant 256 : i32
    %11 = vector.broadcast %c256_i32_5 : i32 to vector<1x1x256xi32>
    %12 = arith.cmpi slt, %6, %11 : vector<1x1x256xi32>
    %c2_i32_6 = arith.constant 2 : i32
    %13 = vector.broadcast %c2_i32_6 : i32 to vector<2x1x256xi32>
    %14 = arith.cmpi slt, %10, %13 : vector<2x1x256xi32>
    %15 = vector.broadcast %12 : vector<1x1x256xi1> to vector<2x1x256xi1>
    %16 = arith.andi %15, %14 : vector<2x1x256xi1>
    %cst = arith.constant dense<0xFF800000> : vector<2x256xf32>
    %17 = vector.multi_reduction <maximumf>, %0, %cst [1] : vector<2x4x256xf32> to vector<2x256xf32>
    %18 = vector.shape_cast %17 : vector<2x256xf32> to vector<2x1x256xf32>
    %19 = vector.broadcast %18 : vector<2x1x256xf32> to vector<2x4x256xf32>
    %20 = arith.subf %0, %19 : vector<2x4x256xf32>
    %21 = math.exp %20 : vector<2x4x256xf32>
    %cst_7 = arith.constant dense<0.000000e+00> : vector<2x256xf32>
    %22 = vector.multi_reduction <add>, %21, %cst_7 [1] : vector<2x4x256xf32> to vector<2x256xf32>
    %23 = vector.shape_cast %22 : vector<2x256xf32> to vector<2x1x256xf32>
    %24 = tpu.iota {dimensions = array<i32: 1>} : vector<2x4x256xi32>
    %25 = vector.broadcast %2 : vector<2x1x256xi32> to vector<2x4x256xi32>
    %26 = arith.cmpi eq, %24, %25 : vector<2x4x256xi32>
    %cst_8 = arith.constant 0.000000e+00 : f32
    %27 = vector.broadcast %cst_8 : f32 to vector<2x4x256xf32>
    %28 = arith.select %26, %20, %27 : vector<2x4x256xi1>, vector<2x4x256xf32>
    %cst_9 = arith.constant dense<0.000000e+00> : vector<2x256xf32>
    %29 = vector.multi_reduction <add>, %28, %cst_9 [1] : vector<2x4x256xf32> to vector<2x256xf32>
    %30 = vector.shape_cast %29 : vector<2x256xf32> to vector<2x1x256xf32>
    %cst_10 = arith.constant 0.000000e+00 : f32
    %31 = vector.broadcast %cst_10 : f32 to vector<2x4x256xf32>
    %32 = arith.select %26, %21, %31 : vector<2x4x256xi1>, vector<2x4x256xf32>
    %cst_11 = arith.constant dense<0.000000e+00> : vector<2x256xf32>
    %33 = vector.multi_reduction <add>, %32, %cst_11 [1] : vector<2x4x256xf32> to vector<2x256xf32>
    %34 = vector.shape_cast %33 : vector<2x256xf32> to vector<2x1x256xf32>
    %35 = math.log %23 : vector<2x1x256xf32>
    %36 = arith.subf %35, %30 : vector<2x1x256xf32>
    %37 = arith.divf %34, %23 : vector<2x1x256xf32>
    %cst_12 = arith.constant 1.000000e+00 : f32
    %38 = vector.broadcast %cst_12 : f32 to vector<2x1x256xf32>
    %39 = arith.subf %38, %37 : vector<2x1x256xf32>
    %cst_13 = arith.constant 0.000000e+00 : f32
    %40 = vector.broadcast %cst_13 : f32 to vector<2x1x256xf32>
    %41 = arith.maximumf %39, %40 : vector<2x1x256xf32>
    %cst_14 = arith.constant 1.000000e+00 : f32
    %42 = vector.broadcast %cst_14 : f32 to vector<2x1x256xf32>
    %43 = arith.mulf %42, %41 : vector<2x1x256xf32>
    %44 = arith.mulf %43, %41 : vector<2x1x256xf32>
    %cst_15 = arith.constant 1.000000e+00 : f32
    %45 = vector.broadcast %cst_15 : f32 to vector<2x1x256xf32>
    %46 = arith.mulf %45, %44 : vector<2x1x256xf32>
    %47 = arith.mulf %46, %36 : vector<2x1x256xf32>
    %cst_16 = arith.constant 0.000000e+00 : f32
    %48 = vector.broadcast %cst_16 : f32 to vector<2x1x256xf32>
    %49 = arith.select %16, %47, %48 : vector<2x1x256xi1>, vector<2x1x256xf32>
    %cst_17 = arith.constant dense<0.000000e+00> : vector<2x1xf32>
    %50 = vector.multi_reduction <add>, %49, %cst_17 [2] : vector<2x1x256xf32> to vector<2x1xf32>
    %51 = vector.shape_cast %50 : vector<2x1xf32> to vector<2x1x1xf32>
    %cst_18 = arith.constant dense<0.000000e+00> : vector<1x1xf32>
    %52 = vector.multi_reduction <add>, %51, %cst_18 [0] : vector<2x1x1xf32> to vector<1x1xf32>
    %53 = vector.shape_cast %52 : vector<1x1xf32> to vector<1x1x1xf32>
    %54 = vector.shape_cast %53 : vector<1x1x1xf32> to vector<1x1x1x1xf32>
    %c0_19 = arith.constant 0 : index
    %c0_20 = arith.constant 0 : index
    %c0_21 = arith.constant 0 : index
    %c0_22 = arith.constant 0 : index
    %55 = vector.load %arg4[%c0_19, %c0_20, %c0_21, %c0_22] : memref<1x1x1x1xf32, #tpu.memory_space<vmem>>, vector<1x1x1x1xf32>
    tpu.vector_store %arg4[%c0_19, %c0_20, %c0_21, %c0_22], %54 {strides = array<i32>} : memref<1x1x1x1xf32, #tpu.memory_space<vmem>>, vector<1x1x1x1xf32>,
    return
  }
  func.func @transform_0(%arg0: i32, %arg1: i32) -> (i32, i32, i32) {
    %c0_i32 = arith.constant 0 : i32
    %c0_i32_0 = arith.constant 0 : i32
    return %arg0, %c0_i32, %arg1 : i32, i32, i32
  }
  func.func @transform_1(%arg0: i32, %arg1: i32) -> (i32, i32, i32) {
    %c0_i32 = arith.constant 0 : i32
    %c0_i32_0 = arith.constant 0 : i32
    return %arg0, %c0_i32, %arg1 : i32, i32, i32
  }
  func.func @transform_2(%arg0: i32, %arg1: i32) -> (i32, i32, i32, i32) {
    %c0_i32 = arith.constant 0 : i32
    %c0_i32_0 = arith.constant 0 : i32
    %c0_i32_1 = arith.constant 0 : i32
    return %arg0, %arg1, %c0_i32, %c0_i32_0 : i32, i32, i32, i32
  }
}

</mosaic_0001>

<bundles_post_ra>
// kernel: tpu_custom_call.1
= control target key start
LH: loop header
LB: loop body
LE: loop exit
PB: predicated region body
PF: predicated region fallthrough
CT: control target
= control target key end

     0   :  { %7 = vsyncpa [#allocation3], 0  ;;  %s611_s0 = inlined_call_operand.hbm [shape: f32[2,4,256], index: 0, kind: input, shape index: {}]   ;;  %s612_s1 = inlined_call_operand.vmem [shape: s8[2,1,256], index: 1, kind: input, shape index: {}]   ;;  %s613_s2 = inlined_call_operand.hbm [shape: f32[1,1,1,1], index: 2, kind: output, shape index: {}]  }
   0x1   :  { %8 = vsyncpa [#allocation4], 0  ;;  %s13_s11 = sshll.u32 %s611_s0, 4  ;;  %s455_s12 = smov [#allocation2]   ;;  %s14_s11 = int_to_ptr.hbm [resolvable:$true] %s13_s11 }
   0x2   :  { %s15_s13 = sshll.u32 %s455_s12, 4  ;;  %s456_s14 = smov 128   ;;  %s16_s13 = int_to_ptr.vmem [resolvable:$true] %s15_s13 }
   0x3   :  { %s457_s15 = smov 8  }
   0x4   :  { %21 = dma.hbm_to_vmem [thread:$0]  %s14_s11, 256, %s16_s13, [#allocation3], %s456_s14, %s456_s14, %s457_s15  }
   0x5   :  { %451 = dma.done.wait [#allocation3], 256  }
   0x6   :  { %452 = vsyncadd [#allocation3], 4294967040  ;;  %v28_v0 = vld [vmem:[#allocation2] sm:$0xff]  ;;  %v29_v1 = vld [vmem:[#allocation2 + $0x8] sm:$0xff]  ;;  %vm69_vm0 = vcmask 1043456   ;;  %v155_v46 = vlaneseq  ;;  %s365_s20 = sshll.u32 %s613_s2, 4  ;;  %s366_s20 = int_to_ptr.hbm [resolvable:$true] %s365_s20 }
   0x7   :  { %58 = vst [vmem:[#allocation1] ss:$2 sm:$0xff] %v28_v0  ;;  %v376_v43 = vld [vmem:[%s612_s1] sm:$0xf]   ;;  %s458_s1 = smov [#allocation5]  }
   0x8   :  { %62 = vst [vmem:[#allocation1 + $0x10] ss:$2 sm:$0xff] %v29_v1  ;;  %v377_v45 = vunpack.c.0.s8 %v376_v43  ;;  %v156_v55 = vshrl.u32 %v155_v46, 7  ;;  %s363_s17 = sshll.u32 %s458_s1, 4  ;;  %s364_s17 = int_to_ptr.vmem [resolvable:$true] %s363_s17 }
   0xa   :  { %v157_v47 = vperm.slane %v377_v45, 0  ;;  %v158_v48 = vperm.slane %v377_v45, 4 }
   0xc   :  { %v161_v57 = vperm.slane %v157_v47, 0  ;;  %v162_v58 = vperm.slane %v158_v48, 0 }
   0xe   :  { %v59_v2 = vld.sshfl [vmem:[#allocation1] sm:$0xff pattern:$0x75316420]  ;;  %v60_v3 = vld.sshfl [vmem:[#allocation1 + $0x8] sm:$0xff pattern:$0x75316420]  ;;  %vm490_vm1 = vcmp.eq.s32.totalorder %v156_v55, %v161_v57  ;;  %vm494_vm2 = vcmp.eq.s32.totalorder %v156_v55, %v162_v58 }
   0xf   :  { %v70_v4 = vsel %vm69_vm0, %v59_v2, -inf  ;;  %v77_v5 = vsel %vm69_vm0, %v60_v3, -inf  ;;  %v63_v6 = vld.sshfl [vmem:[#allocation1 + $0x10] sm:$0xff pattern:$0x75316420] }
  0x10   :  { %v71_v7 = vrot.slane %v70_v4, 4  ;;  %v78_v8 = vrot.slane %v77_v5, 4  ;;  %v64_v9 = vld.sshfl [vmem:[#allocation1 + $0x18] sm:$0xff pattern:$0x75316420]  ;;  %v84_v10 = vsel %vm69_vm0, %v63_v6, -inf }
  0x11   :  { %v85_v11 = vrot.slane %v84_v10, 4  ;;  %v91_v12 = vsel %vm69_vm0, %v64_v9, -inf }
  0x12   :  { %v72_v13 = vmax.f32 %v70_v4, %v71_v7  ;;  %v79_v14 = vmax.f32 %v77_v5, %v78_v8  ;;  %v92_v15 = vrot.slane %v91_v12, 4 }
  0x13   :  { %v86_v16 = vmax.f32 %v84_v10, %v85_v11 }
  0x14   :  { %v73_v17 = vrot.slane %v72_v13, 2  ;;  %v80_v18 = vrot.slane %v79_v14, 2  ;;  %v93_v19 = vmax.f32 %v91_v12, %v92_v15 }
  0x15   :  { %v87_v20 = vrot.slane %v86_v16, 2 }
  0x16   :  { %v74_v21 = vmax.f32 %v72_v13, %v73_v17  ;;  %v81_v22 = vmax.f32 %v79_v14, %v80_v18  ;;  %v94_v23 = vrot.slane %v93_v19, 2 }
  0x17   :  { %v88_v24 = vmax.f32 %v86_v16, %v87_v20 }
  0x18   :  { %v75_v25 = vrot.slane %v74_v21, 1  ;;  %v82_v26 = vrot.slane %v81_v22, 1  ;;  %v95_v27 = vmax.f32 %v93_v19, %v94_v23 }
  0x19   :  { %v89_v28 = vrot.slane %v88_v24, 1 }
  0x1a   :  { %v76_v29 = vmax.f32 %v74_v21, %v75_v25  ;;  %v83_v30 = vmax.f32 %v81_v22, %v82_v26  ;;  %v96_v31 = vrot.slane %v95_v27, 1 }
  0x1b   :  { %v90_v33 = vmax.f32 %v88_v24, %v89_v28 }
  0x1c   :  { %v102_v32 = vrot.slane %v83_v30, 4  ;;  %v97_v34 = vmax.f32 %v95_v27, %v96_v31 }
  0x1e   :  { %v104_v35 = vsel %vm69_vm0, %v76_v29, %v102_v32  ;;  %v103_v36 = vrot.slane %v97_v34, 4 }
  0x1f   :  { %v108_v37 = vsub.f32 %v28_v0, %v104_v35 }
  0x20   :  { %v105_v38 = vsel %vm69_vm0, %v90_v33, %v103_v36 }
  0x21   :  { %v110_v39 = vmul.f32 1.442695, %v108_v37  ;;  %v109_v40 = vsub.f32 %v29_v1, %v105_v38  ;;  %v378_v1 = vunpack.c.1.s8 %v376_v43 }
  0x23   :  { %383 = vpow2.f32 %v110_v39  ;;  %v112_v41 = vmul.f32 1.442695, %v109_v40  ;;  %v159_v14 = vperm.slane %v378_v1, 0  ;;  %v160_v20 = vperm.slane %v378_v1, 4 }
  0x25   :  { %385 = vpow2.f32 %v112_v41  ;;  %v163_v28 = vperm.slane %v159_v14, 0  ;;  %v164_v30 = vperm.slane %v160_v20, 0 }
  0x27   :  { %vm521_vm3 = vcmp.eq.s32.totalorder %v156_v55, %v163_v28  ;;  %vm525_vm4 = vcmp.eq.s32.totalorder %v156_v55, %v164_v30 }
  0x29   :  { %v384_v42 = vpop.eup %383 }
  0x2a   :  { %116 = vst [vmem:[#allocation1] ss:$2 sm:$0xff] %v384_v42 }
  0x2b   :  { %v386_v44 = vpop.eup %385 }
  0x2c   :  { %120 = vst [vmem:[#allocation1 + $0x10] ss:$2 sm:$0xff] %v386_v44 }
  0x31   :  { %v117_v49 = vld.sshfl [vmem:[#allocation1] sm:$0xff pattern:$0x75316420]  ;;  %v118_v50 = vld.sshfl [vmem:[#allocation1 + $0x8] sm:$0xff pattern:$0x75316420] }
  0x32   :  { %v127_v51 = vsel %vm69_vm0, %v117_v49, 0.0  ;;  %v134_v52 = vsel %vm69_vm0, %v118_v50, 0.0  ;;  %171 = vst [vmem:[#allocation1] ss:$2 sm:$0xff] %v108_v37 }
  0x33   :  { %v128_v53 = vrot.slane %v127_v51, 4  ;;  %v135_v54 = vrot.slane %v134_v52, 4  ;;  %v121_v56 = vld.sshfl [vmem:[#allocation1 + $0x10] sm:$0xff pattern:$0x75316420] }
  0x34   :  { %v122_v59 = vld.sshfl [vmem:[#allocation1 + $0x18] sm:$0xff pattern:$0x75316420]  ;;  %v141_v60 = vsel %vm69_vm0, %v121_v56, 0.0 }
  0x35   :  { %v129_v61 = vadd.f32 %v128_v53, %v127_v51  ;;  %v136_v62 = vadd.f32 %v135_v54, %v134_v52  ;;  %v142_v63 = vrot.slane %v141_v60, 4  ;;  %v148_v0 = vsel %vm69_vm0, %v122_v59, 0.0  ;;  %175 = vst [vmem:[#allocation1 + $0x10] ss:$2 sm:$0xff] %v109_v40 }
  0x36   :  { %v149_v4 = vrot.slane %v148_v0, 4 }
  0x37   :  { %v130_v2 = vrot.slane %v129_v61, 2  ;;  %v137_v3 = vrot.slane %v136_v62, 2  ;;  %v143_v5 = vadd.f32 %v142_v63, %v141_v60 }
  0x38   :  { %v150_v18 = vadd.f32 %v149_v4, %v148_v0 }
  0x39   :  { %v131_v6 = vadd.f32 %v130_v2, %v129_v61  ;;  %v138_v7 = vadd.f32 %v137_v3, %v136_v62  ;;  %v172_v10 = vld.sshfl [vmem:[#allocation1] sm:$0xff pattern:$0x75316420]  ;;  %v173_v11 = vld.sshfl [vmem:[#allocation1 + $0x8] sm:$0xff pattern:$0x75316420] }
  0x3a   :  { %v182_v12 = vsel %vm490_vm1, %v172_v10, 0.0  ;;  %v183_v13 = vsel %vm494_vm2, %v173_v11, 0.0  ;;  %214 = vst [vmem:[#allocation1] ss:$2 sm:$0xff] %v384_v42  ;;  %v144_v19 = vrot.slane %v143_v5, 2  ;;  %v151_v27 = vrot.slane %v150_v18, 2 }
  0x3b   :  { %v132_v15 = vrot.slane %v131_v6, 1  ;;  %v186_v16 = vsel %vm69_vm0, %v182_v12, 0.0  ;;  %v193_v17 = vsel %vm69_vm0, %v183_v13, 0.0  ;;  %v139_v23 = vrot.slane %v138_v7, 1 }
  0x3c   :  { %v504_v21 = vld.sshfl [vmem:[#allocation1 + $0x10] sm:$0xff pattern:$0x75316420]  ;;  %v187_v24 = vrot.slane %v186_v16, 4  ;;  %v194_v25 = vrot.slane %v193_v17, 4  ;;  %v145_v29 = vadd.f32 %v144_v19, %v143_v5  ;;  %v519_v40 = vadd.f32 %v151_v27, %v150_v18 }
  0x3d   :  { %v506_v22 = vadd.f32 %v132_v15, %v131_v6  ;;  %v508_v26 = vld.sshfl [vmem:[#allocation1 + $0x18] sm:$0xff pattern:$0x75316420]  ;;  %v510_v31 = vadd.f32 %v139_v23, %v138_v7  ;;  %v184_v51 = vsel %vm521_vm3, %v504_v21, 0.0 }
  0x3e   :  { %218 = vst [vmem:[#allocation1 + $0x10] ss:$2 sm:$0xff] %v386_v44  ;;  %v188_v32 = vadd.f32 %v187_v24, %v186_v16  ;;  %v195_v33 = vadd.f32 %v194_v25, %v193_v17  ;;  %v146_v44 = vrot.slane %v145_v29, 1  ;;  %v153_v54 = vrot.slane %v519_v40, 1 }
  0x3f   :  { %387 = vrcp.f32 %v506_v22  ;;  %v278_v48 = vand.u32 2147483647, %v506_v22  ;;  %vm274_vm5 = vweird.f32 %v506_v22  ;;  %v280_v53 = vand.u32 2147483648, %v506_v22 }
  0x40   :  { %v189_v46 = vrot.slane %v188_v32, 2  ;;  %v196_v47 = vrot.slane %v195_v33, 2  ;;  %389 = vrcp.f32 %v510_v31  ;;  %vm289_vm6 = vweird.f32 %v510_v31 }
  0x41   :  { %v215_v34 = vld.sshfl [vmem:[#allocation1] sm:$0xff pattern:$0x75316420]  ;;  %v216_v35 = vld.sshfl [vmem:[#allocation1 + $0x8] sm:$0xff pattern:$0x75316420]  ;;  %391 = vlog2.f32 %v506_v22  ;;  %v545_v62 = vadd.f32 %v146_v44, %v145_v29  ;;  %v582_v41 = vadd.f32 %v153_v54, %v519_v40 }
  0x42   :  { %v225_v36 = vsel %vm490_vm1, %v215_v34, 0.0  ;;  %v226_v37 = vsel %vm494_vm2, %v216_v35, 0.0  ;;  %393 = vlog2.f32 %v510_v31  ;;  %v190_v59 = vadd.f32 %v189_v46, %v188_v32 }
  0x43   :  { %v229_v38 = vsel %vm69_vm0, %v225_v36, 0.0  ;;  %v236_v39 = vsel %vm69_vm0, %v226_v37, 0.0  ;;  %v197_v60 = vadd.f32 %v196_v47, %v195_v33  ;;  %vm541_vm7 = vcmp.eq.f32.partialorder %v278_v48, 8.507059e+37 }
  0x44   :  { %v230_v42 = vrot.slane %v229_v38, 4  ;;  %v237_v43 = vrot.slane %v236_v39, 4  ;;  %v281_v4 = vor.u32 1.1754944e-38, %v280_v53  ;;  %v293_v5 = vand.u32 2147483647, %v510_v31 }
  0x45   :  { %v388_v52 = vpop.eup %387  ;;  %v219_v58 = vld.sshfl [vmem:[#allocation1 + $0x10] sm:$0xff pattern:$0x75316420]  ;;  %v220_v63 = vld.sshfl [vmem:[#allocation1 + $0x18] sm:$0xff pattern:$0x75316420]  ;;  %395 = vrcp.f32 %v545_v62  ;;  %vm304_vm13 = vweird.f32 %v545_v62  ;;  %vm319_vm1 = vweird.f32 %v582_v41 }
  0x46   :  { %v231_v49 = vadd.f32 %v230_v42, %v229_v38  ;;  %v238_v50 = vadd.f32 %v237_v43, %v236_v39  ;;  %v270_v57 = vmul.f32 %v388_v52, %v506_v22  ;;  %vm275_vm8 = vweird.f32 %v388_v52  ;;  %v390_v3 = vpop.eup %389 }
  0x47   :  { %v295_v6 = vand.u32 2147483648, %v510_v31  ;;  %v227_v7 = vsel %vm521_vm3, %v219_v58, 0.0  ;;  %v392_v8 = vpop.eup %391  ;;  %v285_v11 = vmul.f32 %v390_v3, %v510_v31  ;;  %v228_v12 = vsel %vm525_vm4, %v220_v63, 0.0  ;;  %vm556_vm9 = vmor %vm274_vm5, %vm275_vm8 }
  0x48   :  { %v232_v55 = vrot.slane %v231_v49, 2  ;;  %v239_v56 = vrot.slane %v238_v50, 2  ;;  %v271_v2 = vsub.f32 1.0, %v270_v57  ;;  %v394_v13 = vpop.eup %393  ;;  %v191_v14 = vrot.slane %v190_v59, 1 }
  0x49   :  { %v185_v17 = vsel %vm525_vm4, %v508_v26, 0.0  ;;  %v243_v18 = vsel %vm69_vm0, %v227_v7, 0.0  ;;  %v286_v21 = vsub.f32 1.0, %v285_v11  ;;  %vm290_vm10 = vweird.f32 %v390_v3 }
  0x4a   :  { %v233_v0 = vadd.f32 %v232_v55, %v231_v49  ;;  %v240_v1 = vadd.f32 %v239_v56, %v238_v50  ;;  %v272_v10 = vmul.f32 %v388_v52, %v271_v2  ;;  %v198_v23 = vrot.slane %v197_v60, 1  ;;  %vm576_vm12 = vmor %vm289_vm6, %vm290_vm10 }
  0x4b   :  { %v200_v24 = vsel %vm69_vm0, %v184_v51, 0.0  ;;  %v244_v25 = vrot.slane %v243_v18, 4  ;;  %v250_v22 = vsel %vm69_vm0, %v228_v12, 0.0  ;;  %v287_v28 = vmul.f32 %v390_v3, %v286_v21  ;;  %v396_v57 = vpop.eup %395 }
  0x4c   :  { %v234_v9 = vrot.slane %v233_v0, 1  ;;  %v241_v15 = vrot.slane %v240_v1, 1  ;;  %v273_v20 = vadd.f32 %v388_v52, %v272_v10  ;;  %vm568_vm11 = vcmp.eq.f32.partialorder %v293_v5, 8.507059e+37 }
  0x4d   :  { %v296_v26 = vor.u32 1.1754944e-38, %v295_v6  ;;  %v207_v33 = vsel %vm69_vm0, %v185_v17, 0.0  ;;  %v245_v34 = vadd.f32 %v244_v25, %v243_v18  ;;  %v251_v35 = vrot.slane %v250_v22, 4 }
  0x4e   :  { %v235_v19 = vadd.f32 %v234_v9, %v233_v0  ;;  %v277_v27 = vsel %vm556_vm9, %v388_v52, %v273_v20  ;;  %v242_v36 = vadd.f32 %v241_v15, %v240_v1  ;;  %v288_v38 = vadd.f32 %v390_v3, %v287_v28 }
  0x4f   :  { %v282_v30 = vsel %vm541_vm7, %v281_v4, %v277_v27  ;;  %v201_v39 = vrot.slane %v200_v24, 4  ;;  %v246_v42 = vrot.slane %v245_v34, 2  ;;  %v192_v43 = vadd.f32 %v191_v14, %v190_v59 }
  0x50   :  { %v283_v37 = vmul.f32 %v282_v30, %v235_v19  ;;  %v258_v31 = vmul.f32 0.6931472, %v392_v8  ;;  %v292_v44 = vsel %vm576_vm12, %v390_v3, %v288_v38  ;;  %v199_v46 = vadd.f32 %v198_v23, %v197_v60 }
  0x51   :  { %v297_v47 = vsel %vm568_vm11, %v296_v26, %v292_v44  ;;  %v208_v48 = vrot.slane %v207_v33, 4  ;;  %v252_v49 = vadd.f32 %v251_v35, %v250_v22  ;;  %v260_v50 = vmul.f32 0.6931472, %v394_v13 }
  0x52   :  { %v329_v45 = vsub.f32 1.0, %v283_v37  ;;  %v298_v51 = vmul.f32 %v297_v47, %v242_v36  ;;  %v202_v40 = vadd.f32 %v201_v39, %v200_v24  ;;  %v247_v53 = vadd.f32 %v246_v42, %v245_v34 }
  0x53   :  { %v265_v54 = vsub.f32 %v258_v31, %v192_v43  ;;  %v209_v58 = vadd.f32 %v208_v48, %v207_v33  ;;  %v253_v59 = vrot.slane %v252_v49, 2  ;;  %397 = vrcp.f32 %v582_v41 }
  0x54   :  { %v333_v52 = vmax.f32 %v329_v45, 0.0  ;;  %v330_v55 = vsub.f32 1.0, %v298_v51  ;;  %v266_v61 = vsub.f32 %v260_v50, %v199_v46  ;;  %v203_v63 = vrot.slane %v202_v40, 2 }
  0x55   :  { %v300_v0 = vmul.f32 %v396_v57, %v545_v62  ;;  %v248_v1 = vrot.slane %v247_v53, 1  ;;  %v308_v2 = vand.u32 2147483647, %v545_v62  ;;  %v310_v3 = vand.u32 2147483648, %v545_v62 }
  0x56   :  { %v337_v56 = vmul.f32 %v333_v52, %v333_v52  ;;  %v334_v60 = vmax.f32 %v330_v55, 0.0  ;;  %vm305_vm14 = vweird.f32 %v396_v57  ;;  %v210_v7 = vrot.slane %v209_v58, 2 }
  0x57   :  { %v301_v6 = vsub.f32 1.0, %v300_v0  ;;  %v254_v8 = vadd.f32 %v253_v59, %v252_v49  ;;  %399 = vlog2.f32 %v545_v62  ;;  %v204_v12 = vadd.f32 %v203_v63, %v202_v40  ;;  %vm598_vm15 = vmor %vm304_vm13, %vm305_vm14 }
  0x58   :  { %v338_v4 = vmul.f32 %v334_v60, %v334_v60  ;;  %v341_v5 = vmul.f32 %v337_v56, %v265_v54  ;;  %401 = vlog2.f32 %v582_v41  ;;  %vm309_vm0 = vcmp.eq.f32.partialorder %v308_v2, 8.507059e+37 }
  0x59   :  { %v302_v10 = vmul.f32 %v396_v57, %v301_v6  ;;  %v398_v11 = vpop.eup %397  ;;  %v311_v14 = vor.u32 1.1754944e-38, %v310_v3  ;;  %v249_v16 = vadd.f32 %v248_v1, %v247_v53  ;;  %v211_v19 = vadd.f32 %v210_v7, %v209_v58 }
  0x5a   :  { %v342_v9 = vmul.f32 %v338_v4, %v266_v61  ;;  %v315_v18 = vmul.f32 %v398_v11, %v582_v41  ;;  %v255_v20 = vrot.slane %v254_v8, 1  ;;  %v325_v21 = vand.u32 2147483648, %v582_v41 }
  0x5b   :  { %v303_v17 = vadd.f32 %v396_v57, %v302_v10  ;;  %vm320_vm2 = vweird.f32 %v398_v11  ;;  %v323_v24 = vand.u32 2147483647, %v582_v41  ;;  %v205_v27 = vrot.slane %v204_v12, 1 }
  0x5c   :  { %v349_v15 = vadd.f32 %v342_v9, %v341_v5  ;;  %v316_v23 = vsub.f32 1.0, %v315_v18  ;;  %v212_v30 = vrot.slane %v211_v19, 1  ;;  %vm321_vm3 = vmor %vm319_vm1, %vm320_vm2  ;;  %v326_v32 = vor.u32 1.1754944e-38, %v325_v21 }
  0x5d   :  { %v307_v62 = vsel %vm598_vm15, %v396_v57, %v303_v17  ;;  %v400_v22 = vpop.eup %399  ;;  %v256_v33 = vadd.f32 %v255_v20, %v254_v8  ;;  %vm324_vm4 = vcmp.eq.f32.partialorder %v323_v24, 8.507059e+37  ;;  %v206_v36 = vadd.f32 %v205_v27, %v204_v12 }
  0x5e   :  { %350 = vadd.xlane.f32.xlu0 %v349_v15  ;;  %v312_v25 = vsel %vm309_vm0, %v311_v14, %v307_v62  ;;  %v317_v29 = vmul.f32 %v398_v11, %v316_v23  ;;  %v402_v26 = vpop.eup %401  ;;  %v262_v37 = vmul.f32 0.6931472, %v400_v22  ;;  %v213_v43 = vadd.f32 %v212_v30, %v211_v19 }
  0x5f   :  { %v313_v28 = vmul.f32 %v312_v25, %v249_v16  ;;  %v264_v41 = vmul.f32 0.6931472, %v402_v26  ;;  %vm356_vm5 = vcmask 0  }
  0x60   :  { %v318_v34 = vadd.f32 %v398_v11, %v317_v29  ;;  %v267_v44 = vsub.f32 %v262_v37, %v206_v36 }
  0x61   :  { %v331_v35 = vsub.f32 1.0, %v313_v28  ;;  %v268_v47 = vsub.f32 %v264_v41, %v213_v43 }
  0x62   :  { %v322_v38 = vsel %vm321_vm3, %v398_v11, %v318_v34 }
  0x63   :  { %v335_v39 = vmax.f32 %v331_v35, 0.0  ;;  %v327_v42 = vsel %vm324_vm4, %v326_v32, %v322_v38 }
  0x64   :  { %v328_v31 = vmul.f32 %v327_v42, %v256_v33 }
  0x65   :  { %v339_v46 = vmul.f32 %v335_v39, %v335_v39 }
  0x66   :  { %v332_v45 = vsub.f32 1.0, %v328_v31 }
  0x67   :  { %v343_v50 = vmul.f32 %v339_v46, %v267_v44 }
  0x68   :  { %v336_v48 = vmax.f32 %v332_v45, 0.0 }
  0x6a   :  { %v340_v49 = vmul.f32 %v336_v48, %v336_v48 }
  0x6c   :  { %v344_v51 = vmul.f32 %v340_v49, %v268_v47 }
  0x6e   :  { %v352_v52 = vadd.f32 %v344_v51, %v343_v50 }
  0x70   :  { %353 = vadd.xlane.f32.xlu0 %v352_v52 }
  0xd1   :  { %v351_v40 = vpop.xlane.xlu0 %350 }
  0xe3   :  { %v354_v53 = vpop.xlane.xlu0 %353 }
  0xe4   :  { %v355_v54 = vadd.f32 %v354_v53, %v351_v40 }
  0xe6   :  { %357 = vst.msk [vmem:[#allocation5] sm:$0x1] %vm356_vm5, %v355_v54 }
  0xe7   :  { %368 = dma.vmem_to_hbm [thread:$0]  %s364_s17, 16, %s366_s20, [#allocation4]  }
  0xe8   :  { %453 = dma.done.wait [#allocation4], 16  }
  0xe9   :  { %454 = vsyncadd [#allocation4], 4294967280 }
  0xea   :  { %373 = vsyncpa [#allocation3], 1 }
  0xeb   :  { %374 = vsyncpa [#allocation4], 1 }

</bundles_post_ra>
